<compile_context>
chip_gen: v5e
topology: v5e:2x2
jax: 0.10.0
libtpu: 0.0.40
codegen_flags: <defaults>
</compile_context>

<pallas_src>
import jax
import jax.numpy as jnp
from jax.experimental import pallas as pl
from jax.experimental.pallas import tpu as pltpu


def _round_up(x, m):
    return ((x + m - 1) // m) * m


def _contrastive_kernel(txt_ref, ppg_ref, wtxt_ref, btxt_ref,
                        wppg_ref, bppg_ref, txt_out_ref, ppg_out_ref):
    # txt projection: (TM, S) @ (S, E) + (1, E)   -- weight already (in, out)
    b_txt = btxt_ref[...]                                   # (1, E) f32
    txt_out_ref[...] = (
        jnp.dot(txt_ref[...], wtxt_ref[...],
                preferred_element_type=jnp.float32) + b_txt
    )
    # ppg projection: (TM, P) @ (P, E) + (1, E)
    b_ppg = bppg_ref[...]                                   # (1, E) f32
    ppg_out_ref[...] = (
        jnp.dot(ppg_ref[...], wppg_ref[...],
                preferred_element_type=jnp.float32) + b_ppg
    )


def contrastive_forward(txt_feature, ppg_feature, w_txt, b_txt, w_ppg, b_ppg,
                        *, block_m=256):
    """Both linear projections in one Pallas call, batch-tiled over a parallel grid.

    txt_feature: (B, sentence_feature_dim)
    ppg_feature: (B, PPG_feature_dim)
    w_txt: (embed_dim, sentence_feature_dim), b_txt: (embed_dim,)   [PyTorch layout]
    w_ppg: (embed_dim, PPG_feature_dim),      b_ppg: (embed_dim,)
    Returns (txt_embed, ppg_embed), each (B, embed_dim) float32.
    """
    txt = jnp.asarray(txt_feature, jnp.float32)
    ppg = jnp.asarray(ppg_feature, jnp.float32)
    w_txt = jnp.asarray(w_txt, jnp.float32)
    w_ppg = jnp.asarray(w_ppg, jnp.float32)
    b_txt = jnp.asarray(b_txt, jnp.float32)
    b_ppg = jnp.asarray(b_ppg, jnp.float32)

    B, S = txt.shape
    _, P = ppg.shape
    E = w_txt.shape[0]

    # ---- pad everything to TPU-friendly shapes (zeros do not change results,
    #      padded rows/cols are sliced off below). ----
    TM = min(block_m, _round_up(B, 8))        # batch tile, multiple of 8
    B_pad = _round_up(B, TM)
    S_pad = _round_up(S, 128)                 # contraction dims -> lane aligned
    P_pad = _round_up(P, 128)
    E_pad = _round_up(E, 128)                 # output lanes -> unmasked stores

    txt_p = jnp.pad(txt, ((0, B_pad - B), (0, S_pad - S)))
    ppg_p = jnp.pad(ppg, ((0, B_pad - B), (0, P_pad - P)))
    # Pre-transpose weights to (in_features, out_features) so the kernel's dot
    # contracts the last axis of x with the first axis of w (no in-kernel .T).
    wtxt_t = jnp.pad(w_txt.T, ((0, S_pad - S), (0, E_pad - E)))
    wppg_t = jnp.pad(w_ppg.T, ((0, P_pad - P), (0, E_pad - E)))
    btxt_p = jnp.pad(b_txt.reshape(1, E), ((0, 0), (0, E_pad - E)))
    bppg_p = jnp.pad(b_ppg.reshape(1, E), ((0, 0), (0, E_pad - E)))

    grid = (B_pad // TM,)

    txt_out, ppg_out = pl.pallas_call(
        _contrastive_kernel,
        out_shape=(
            jax.ShapeDtypeStruct((B_pad, E_pad), jnp.float32),
            jax.ShapeDtypeStruct((B_pad, E_pad), jnp.float32),
        ),
        grid=grid,
        in_specs=[
            pl.BlockSpec((TM, S_pad), lambda i: (i, 0)),       # txt rows tile
            pl.BlockSpec((TM, P_pad), lambda i: (i, 0)),       # ppg rows tile
            pl.BlockSpec((S_pad, E_pad), lambda i: (0, 0)),    # W_txt^T resident
            pl.BlockSpec((1, E_pad), lambda i: (0, 0)),        # b_txt resident
            pl.BlockSpec((P_pad, E_pad), lambda i: (0, 0)),    # W_ppg^T resident
            pl.BlockSpec((1, E_pad), lambda i: (0, 0)),        # b_ppg resident
        ],
        out_specs=(
            pl.BlockSpec((TM, E_pad), lambda i: (i, 0)),
            pl.BlockSpec((TM, E_pad), lambda i: (i, 0)),
        ),
        compiler_params=pltpu.CompilerParams(
            dimension_semantics=("parallel",)),
    )(txt_p, ppg_p, wtxt_t, btxt_p, wppg_t, bppg_p)

    # TODO(synk): if production in/out feature dims grow beyond a few thousand,
    # add K/N tiling for the (resident) weight blocks instead of full blocks.
    return txt_out[:B, :E], ppg_out[:B, :E]


def init_params(key, sentence_feature_dim, ppg_feature_dim, embed_dim):
    """Deterministic init mimicking nn.Linear's uniform(-1/sqrt(fan_in), ...)."""
    k1, k2, k3, k4 = jax.random.split(key, 4)
    bound_t = 1.0 / (sentence_feature_dim ** 0.5)
    bound_p = 1.0 / (ppg_feature_dim ** 0.5)
    w_txt = jax.random.uniform(k1, (embed_dim, sentence_feature_dim),
                               jnp.float32, -bound_t, bound_t)
    b_txt = jax.random.uniform(k2, (embed_dim,), jnp.float32, -bound_t, bound_t)
    w_ppg = jax.random.uniform(k3, (embed_dim, ppg_feature_dim),
                               jnp.float32, -bound_p, bound_p)
    b_ppg = jax.random.uniform(k4, (embed_dim,), jnp.float32, -bound_p, bound_p)
    return w_txt, b_txt, w_ppg, b_ppg


if __name__ == "__main__":
    key = jax.random.PRNGKey(0)
    B = 2
    sentence_feature_dim = 32
    ppg_feature_dim = 16
    embed_dim = 8

    k_txt, k_ppg, k_params = jax.random.split(key, 3)
    txt_feature = jax.random.normal(k_txt, (B, sentence_feature_dim), jnp.float32)
    ppg_feature = jax.random.normal(k_ppg, (B, ppg_feature_dim), jnp.float32)
    w_txt, b_txt, w_ppg, b_ppg = init_params(
        k_params, sentence_feature_dim, ppg_feature_dim, embed_dim)

    txt_embed, ppg_embed = contrastive_forward(
        txt_feature, ppg_feature, w_txt, b_txt, w_ppg, b_ppg)
    jax.block_until_ready((txt_embed, ppg_embed))

    # Reference check in plain JAX (same math as PyTorch nn.Linear).
    ref_txt = txt_feature @ w_txt.T + b_txt
    ref_ppg = ppg_feature @ w_ppg.T + b_ppg
    assert txt_embed.shape == (B, embed_dim)
    assert ppg_embed.shape == (B, embed_dim)
    assert jnp.allclose(txt_embed, ref_txt, atol=1e-5), "txt mismatch"
    assert jnp.allclose(ppg_embed, ref_ppg, atol=1e-5), "ppg mismatch"

    print("KERNEL_OK")
</pallas_src>

<mosaic_0001>
module attributes {stable_mosaic.version = 11 : i64} {
  func.func @_contrastive_kernel(%arg0: i32, %arg1: memref<8x128xf32, #tpu.memory_space<vmem>>, %arg2: memref<8x128xf32, #tpu.memory_space<vmem>>, %arg3: memref<128x128xf32, #tpu.memory_space<vmem>>, %arg4: memref<1x128xf32, #tpu.memory_space<vmem>>, %arg5: memref<128x128xf32, #tpu.memory_space<vmem>>, %arg6: memref<1x128xf32, #tpu.memory_space<vmem>>, %arg7: memref<8x128xf32, #tpu.memory_space<vmem>>, %arg8: memref<8x128xf32, #tpu.memory_space<vmem>>) attributes {dimension_semantics = [#tpu.dimension_semantics<parallel>], iteration_bounds = array<i64: 1>, scalar_prefetch = 0 : i64, scratch_operands = 0 : i64, tpu.core_type = #tpu.core_type<tc>, window_params = [{transform_indices = @transform_0, window_bounds = array<i64: 8, 128>}, {transform_indices = @transform_1, window_bounds = array<i64: 8, 128>}, {pipeline_mode = #tpu.pipeline_mode<synchronous>, transform_indices = @transform_2, window_bounds = array<i64: 128, 128>}, {pipeline_mode = #tpu.pipeline_mode<synchronous>, transform_indices = @transform_3, window_bounds = array<i64: 1, 128>}, {pipeline_mode = #tpu.pipeline_mode<synchronous>, transform_indices = @transform_4, window_bounds = array<i64: 128, 128>}, {pipeline_mode = #tpu.pipeline_mode<synchronous>, transform_indices = @transform_5, window_bounds = array<i64: 1, 128>}, {transform_indices = @transform_6, window_bounds = array<i64: 8, 128>}, {transform_indices = @transform_7, window_bounds = array<i64: 8, 128>}]} {
    %c0 = arith.constant 0 : index
    %c0_0 = arith.constant 0 : index
    %0 = vector.load %arg4[%c0, %c0_0] : memref<1x128xf32, #tpu.memory_space<vmem>>, vector<1x128xf32>
    %c0_1 = arith.constant 0 : index
    %c0_2 = arith.constant 0 : index
    %1 = vector.load %arg1[%c0_1, %c0_2] : memref<8x128xf32, #tpu.memory_space<vmem>>, vector<8x128xf32>
    %c0_3 = arith.constant 0 : index
    %c0_4 = arith.constant 0 : index
    %2 = vector.load %arg3[%c0_3, %c0_4] : memref<128x128xf32, #tpu.memory_space<vmem>>, vector<128x128xf32>
    %cst = arith.constant dense<0.000000e+00> : vector<8x128xf32>
    %3 = tpu.matmul %1, %2, %cst {dimension_numbers = #tpu.dot_dimension_numbers<[1], [0], [0], [1], [0, 0, 1, 1], [], []>} : vector<8x128xf32>, vector<128x128xf32>, vector<8x128xf32> -> vector<8x128xf32>
    %4 = vector.broadcast %0 : vector<1x128xf32> to vector<8x128xf32>
    %5 = arith.addf %3, %4 : vector<8x128xf32>
    %c0_5 = arith.constant 0 : index
    %c0_6 = arith.constant 0 : index
    %6 = vector.load %arg7[%c0_5, %c0_6] : memref<8x128xf32, #tpu.memory_space<vmem>>, vector<8x128xf32>
    tpu.vector_store %arg7[%c0_5, %c0_6], %5 {strides = array<i32>} : memref<8x128xf32, #tpu.memory_space<vmem>>, vector<8x128xf32>,
    %c0_7 = arith.constant 0 : index
    %c0_8 = arith.constant 0 : index
    %7 = vector.load %arg6[%c0_7, %c0_8] : memref<1x128xf32, #tpu.memory_space<vmem>>, vector<1x128xf32>
    %c0_9 = arith.constant 0 : index
    %c0_10 = arith.constant 0 : index
    %8 = vector.load %arg2[%c0_9, %c0_10] : memref<8x128xf32, #tpu.memory_space<vmem>>, vector<8x128xf32>
    %c0_11 = arith.constant 0 : index
    %c0_12 = arith.constant 0 : index
    %9 = vector.load %arg5[%c0_11, %c0_12] : memref<128x128xf32, #tpu.memory_space<vmem>>, vector<128x128xf32>
    %cst_13 = arith.constant dense<0.000000e+00> : vector<8x128xf32>
    %10 = tpu.matmul %8, %9, %cst_13 {dimension_numbers = #tpu.dot_dimension_numbers<[1], [0], [0], [1], [0, 0, 1, 1], [], []>} : vector<8x128xf32>, vector<128x128xf32>, vector<8x128xf32> -> vector<8x128xf32>
    %11 = vector.broadcast %7 : vector<1x128xf32> to vector<8x128xf32>
    %12 = arith.addf %10, %11 : vector<8x128xf32>
    %c0_14 = arith.constant 0 : index
    %c0_15 = arith.constant 0 : index
    %13 = vector.load %arg8[%c0_14, %c0_15] : memref<8x128xf32, #tpu.memory_space<vmem>>, vector<8x128xf32>
    tpu.vector_store %arg8[%c0_14, %c0_15], %12 {strides = array<i32>} : memref<8x128xf32, #tpu.memory_space<vmem>>, vector<8x128xf32>,
    return
  }
  func.func @transform_0(%arg0: i32) -> (i32, i32) {
    %c0_i32 = arith.constant 0 : i32
    %c0_i32_0 = arith.constant 0 : i32
    return %arg0, %c0_i32 : i32, i32
  }
  func.func @transform_1(%arg0: i32) -> (i32, i32) {
    %c0_i32 = arith.constant 0 : i32
    %c0_i32_0 = arith.constant 0 : i32
    return %arg0, %c0_i32 : i32, i32
  }
  func.func @transform_2(%arg0: i32) -> (i32, i32) {
    %c0_i32 = arith.constant 0 : i32
    %c0_i32_0 = arith.constant 0 : i32
    %c0_i32_1 = arith.constant 0 : i32
    return %c0_i32, %c0_i32_0 : i32, i32
  }
  func.func @transform_3(%arg0: i32) -> (i32, i32) {
    %c0_i32 = arith.constant 0 : i32
    %c0_i32_0 = arith.constant 0 : i32
    %c0_i32_1 = arith.constant 0 : i32
    return %c0_i32, %c0_i32_0 : i32, i32
  }
  func.func @transform_4(%arg0: i32) -> (i32, i32) {
    %c0_i32 = arith.constant 0 : i32
    %c0_i32_0 = arith.constant 0 : i32
    %c0_i32_1 = arith.constant 0 : i32
    return %c0_i32, %c0_i32_0 : i32, i32
  }
  func.func @transform_5(%arg0: i32) -> (i32, i32) {
    %c0_i32 = arith.constant 0 : i32
    %c0_i32_0 = arith.constant 0 : i32
    %c0_i32_1 = arith.constant 0 : i32
    return %c0_i32, %c0_i32_0 : i32, i32
  }
  func.func @transform_6(%arg0: i32) -> (i32, i32) {
    %c0_i32 = arith.constant 0 : i32
    %c0_i32_0 = arith.constant 0 : i32
    return %arg0, %c0_i32 : i32, i32
  }
  func.func @transform_7(%arg0: i32) -> (i32, i32) {
    %c0_i32 = arith.constant 0 : i32
    %c0_i32_0 = arith.constant 0 : i32
    return %arg0, %c0_i32 : i32, i32
  }
}

</mosaic_0001>

<bundles_post_ra>
// kernel: tpu_custom_call.1
= control target key start
LH: loop header
LB: loop body
LE: loop exit
PB: predicated region body
PF: predicated region fallthrough
CT: control target
= control target key end

     0   :  { %13 = vsyncpa [#allocation3], 0  ;;  %s441_s0 = inlined_call_operand.hbm [shape: f32[8,128], index: 0, kind: input, shape index: {}]   ;;  %s442_s1 = inlined_call_operand.hbm [shape: f32[8,128], index: 1, kind: input, shape index: {}]   ;;  %s443_s2 = inlined_call_operand.hbm [shape: f32[128,128], index: 2, kind: input, shape index: {}]   ;;  %s444_s3 = inlined_call_operand.vmem [shape: f32[1,128], index: 3, kind: input, shape index: {}]   ;;  %s445_s4 = inlined_call_operand.hbm [shape: f32[128,128], index: 4, kind: input, shape index: {}]   ;;  %s446_s5 = inlined_call_operand.vmem [shape: f32[1,128], index: 5, kind: input, shape index: {}]   ;;  %s447_s6 = inlined_call_operand.hbm [shape: f32[8,128], index: 6, kind: output, shape index: {0}]   ;;  %s448_s7 = inlined_call_operand.hbm [shape: f32[8,128], index: 7, kind: output, shape index: {1}]  }
   0x1   :  { %14 = vsyncpa [#allocation6], 0 }
   0x2   :  { %15 = vsyncpa [#allocation9], 0 }
   0x3   :  { %16 = vsyncpa [#allocation4], 0  ;;  %s34_s26 = sshll.u32 %s442_s1, 4  ;;  %s35_s26 = int_to_ptr.hbm [resolvable:$true] %s34_s26 }
   0x4   :  { %17 = vsyncpa [#allocation12], 0  ;;  %s369_s27 = smov [#allocation5]   ;;  %s23_s8 = sshll.u32 %s441_s0, 4  ;;  %s24_s8 = int_to_ptr.hbm [resolvable:$true] %s23_s8 }
   0x5   :  { %s36_s28 = sshll.u32 %s369_s27, 4  ;;  %s370_s9 = smov [#allocation2]   ;;  %s37_s28 = int_to_ptr.vmem [resolvable:$true] %s36_s28 }
   0x6   :  { %39 = dma.hbm_to_vmem [thread:$0]  %s35_s26, 128, %s37_s28, [#allocation6]  }
   0x7   :  { %s25_s10 = sshll.u32 %s370_s9, 4  ;;  %s44_s13 = sshll.u32 %s443_s2, 4  ;;  %s26_s10 = int_to_ptr.vmem [resolvable:$true] %s25_s10  ;;  %s45_s13 = int_to_ptr.hbm [resolvable:$true] %s44_s13 }
   0x8   :  { %28 = dma.hbm_to_vmem [thread:$0]  %s24_s8, 128, %s26_s10, [#allocation3]  }
   0x9   :  { %s371_s1 = smov [#allocation7]   ;;  %s59_s17 = sshll.u32 %s445_s4, 4  ;;  %s60_s17 = int_to_ptr.hbm [resolvable:$true] %s59_s17 }
   0xa   :  { %s46_s14 = sshll.u32 %s371_s1, 4  ;;  %s372_s18 = smov 128   ;;  %s47_s14 = int_to_ptr.vmem [resolvable:$true] %s46_s14 }
   0xb   :  { %s373_s0 = smov 8   ;;  %s374_s19 = smov [#allocation8]  }
   0xc   :  { %52 = dma.hbm_to_vmem [thread:$0]  %s45_s13, 2048, %s47_s14, [#allocation6], %s372_s18, %s372_s18, %s373_s0  }
   0xd   :  { %s61_s20 = sshll.u32 %s374_s19, 4  ;;  %s62_s20 = int_to_ptr.vmem [resolvable:$true] %s61_s20 }
   0xe   :  { %67 = dma.hbm_to_vmem [thread:$0]  %s60_s17, 2048, %s62_s20, [#allocation9], %s372_s18, %s372_s18, %s373_s0  }
   0xf   :  { %359 = dma.done.wait [#allocation3], 128  }
  0x10   :  { %360 = vsyncadd [#allocation3], 4294967168 }
  0x11   :  { %361 = dma.done.wait [#allocation6], 2176  }
  0x12   :  { %362 = vsyncadd [#allocation6], 4294965120 }
  0x13   :  { %363 = dma.done.wait [#allocation9], 2048  }
  0x14   :  { %364 = vsyncadd [#allocation9], 4294965248  ;;  %v103_v0 = vld [vmem:[#allocation7 + $0x78] sm:$0xff]  ;;  %v102_v2 = vld [vmem:[#allocation7 + $0x70] sm:$0xff]  ;;  %s375_s23 = smov [#allocation10]   ;;  %s177_s27 = sshll.u32 %s447_s6, 4  ;;  %s178_s27 = int_to_ptr.hbm [resolvable:$true] %s177_s27 }
  0x15   :  { %v145_v1 = vld [vmem:[#allocation8 + $0x78] sm:$0xff]  ;;  %107 = vmatpush.msra.mxu0 %v103_v0  ;;  %v144_v3 = vld [vmem:[#allocation8 + $0x70] sm:$0xff]  ;;  %v101_v4 = vld [vmem:[#allocation7 + $0x68] sm:$0xff]  ;;  %s175_s24 = sshll.u32 %s375_s23, 4  ;;  %s376_s28 = smov [#allocation11]   ;;  %s176_s24 = int_to_ptr.vmem [resolvable:$true] %s175_s24 }
  0x16   :  { %149 = vmatpush.msra.mxu1 %v145_v1  ;;  %v143_v5 = vld [vmem:[#allocation8 + $0x68] sm:$0xff]  ;;  %v100_v6 = vld [vmem:[#allocation7 + $0x60] sm:$0xff]  ;;  %v99_v8 = vld [vmem:[#allocation7 + $0x58] sm:$0xff]  ;;  %s186_s29 = sshll.u32 %s376_s28, 4  ;;  %s188_s9 = sshll.u32 %s448_s7, 4  ;;  %s187_s29 = int_to_ptr.vmem [resolvable:$true] %s186_s29  ;;  %s189_s9 = int_to_ptr.hbm [resolvable:$true] %s188_s9 }
  0x17   :  { %108 = vmatpush.msra.mxu0 %v102_v2  ;;  %v142_v7 = vld [vmem:[#allocation8 + $0x60] sm:$0xff]  ;;  %v141_v9 = vld [vmem:[#allocation8 + $0x58] sm:$0xff]  ;;  %v98_v10 = vld [vmem:[#allocation7 + $0x50] sm:$0xff] }
  0x18   :  { %150 = vmatpush.msra.mxu1 %v144_v3  ;;  %v140_v11 = vld [vmem:[#allocation8 + $0x50] sm:$0xff]  ;;  %v97_v12 = vld [vmem:[#allocation7 + $0x48] sm:$0xff]  ;;  %v96_v14 = vld [vmem:[#allocation7 + $0x40] sm:$0xff] }
  0x19   :  { %109 = vmatpush.msra.mxu0 %v101_v4  ;;  %v139_v13 = vld [vmem:[#allocation8 + $0x48] sm:$0xff]  ;;  %v138_v15 = vld [vmem:[#allocation8 + $0x40] sm:$0xff]  ;;  %v95_v16 = vld [vmem:[#allocation7 + $0x38] sm:$0xff] }
  0x1a   :  { %151 = vmatpush.msra.mxu1 %v143_v5  ;;  %v137_v17 = vld [vmem:[#allocation8 + $0x38] sm:$0xff]  ;;  %v94_v18 = vld [vmem:[#allocation7 + $0x30] sm:$0xff]  ;;  %v93_v20 = vld [vmem:[#allocation7 + $0x28] sm:$0xff] }
  0x1b   :  { %110 = vmatpush.msra.mxu0 %v100_v6  ;;  %v136_v19 = vld [vmem:[#allocation8 + $0x30] sm:$0xff]  ;;  %v135_v21 = vld [vmem:[#allocation8 + $0x28] sm:$0xff]  ;;  %v92_v22 = vld [vmem:[#allocation7 + $0x20] sm:$0xff] }
  0x1c   :  { %152 = vmatpush.msra.mxu1 %v142_v7  ;;  %v134_v23 = vld [vmem:[#allocation8 + $0x20] sm:$0xff]  ;;  %v91_v24 = vld [vmem:[#allocation7 + $0x18] sm:$0xff]  ;;  %v90_v26 = vld [vmem:[#allocation7 + $0x10] sm:$0xff] }
  0x1d   :  { %111 = vmatpush.msra.mxu0 %v99_v8  ;;  %v133_v25 = vld [vmem:[#allocation8 + $0x18] sm:$0xff]  ;;  %v132_v27 = vld [vmem:[#allocation8 + $0x10] sm:$0xff]  ;;  %v89_v28 = vld [vmem:[#allocation7 + $0x8] sm:$0xff] }
  0x1e   :  { %153 = vmatpush.msra.mxu1 %v141_v9  ;;  %v131_v29 = vld [vmem:[#allocation8 + $0x8] sm:$0xff]  ;;  %v88_v30 = vld [vmem:[#allocation7] sm:$0xff]  ;;  %v87_v32 = vld [vmem:[#allocation2] sm:$0xff] }
  0x1f   :  { %112 = vmatpush.msra.mxu0 %v98_v10  ;;  %v130_v31 = vld [vmem:[#allocation8] sm:$0xff]  ;;  %v129_v33 = vld [vmem:[#allocation5] sm:$0xff]  ;;  %v213_v34 = vld [vmem:[%s444_s3] ss:$0 sm:$0xff] }
  0x20   :  { %154 = vmatpush.msra.mxu1 %v140_v11  ;;  %v214_v35 = vld [vmem:[%s446_s5] ss:$0 sm:$0xff] }
  0x21   :  { %113 = vmatpush.msra.mxu0 %v97_v12 }
  0x22   :  { %155 = vmatpush.msra.mxu1 %v139_v13 }
  0x23   :  { %114 = vmatpush.msra.mxu0 %v96_v14 }
  0x24   :  { %156 = vmatpush.msra.mxu1 %v138_v15 }
  0x25   :  { %115 = vmatpush.msra.mxu0 %v95_v16 }
  0x26   :  { %157 = vmatpush.msra.mxu1 %v137_v17 }
  0x27   :  { %116 = vmatpush.msra.mxu0 %v94_v18 }
  0x28   :  { %158 = vmatpush.msra.mxu1 %v136_v19 }
  0x29   :  { %117 = vmatpush.msra.mxu0 %v93_v20 }
  0x2a   :  { %159 = vmatpush.msra.mxu1 %v135_v21 }
  0x2b   :  { %118 = vmatpush.msra.mxu0 %v92_v22 }
  0x2c   :  { %160 = vmatpush.msra.mxu1 %v134_v23 }
  0x2d   :  { %119 = vmatpush.msra.mxu0 %v91_v24 }
  0x2e   :  { %161 = vmatpush.msra.mxu1 %v133_v25 }
  0x2f   :  { %120 = vmatpush.msra.mxu0 %v90_v26 }
  0x30   :  { %162 = vmatpush.msra.mxu1 %v132_v27 }
  0x31   :  { %121 = vmatpush.msra.mxu0 %v89_v28 }
  0x32   :  { %163 = vmatpush.msra.mxu1 %v131_v29 }
  0x33   :  { %122 = vmatpush.msra.mxu0 %v88_v30 }
  0x34   :  { %164 = vmatpush.msra.mxu1 %v130_v31  ;;  %123 = vmatmul.f32.vlgmr.msra.gmra.mxu0 %v87_v32 }
  0x35   :  { %165 = vmatmul.f32.vlgmr.msra.gmra.mxu1 %v129_v33 }
  0xb1   :  { %v124_v36 = vpop.f32.mrf.mxu0 }
  0xb2   :  { %v166_v37 = vpop.f32.mrf.mxu1  ;;  %v125_v38 = vadd.f32 %v213_v34, %v124_v36 }
  0xb3   :  { %v167_v39 = vadd.f32 %v214_v35, %v166_v37 }
  0xb4   :  { %127 = vst [vmem:[#allocation10] sm:$0xff] %v125_v38 }
  0xb5   :  { %169 = vst [vmem:[#allocation11] sm:$0xff] %v167_v39  ;;  %180 = dma.vmem_to_hbm [thread:$0]  %s176_s24, 128, %s178_s27, [#allocation4]  }
  0xb6   :  { %191 = dma.vmem_to_hbm [thread:$0]  %s187_s29, 128, %s189_s9, [#allocation12]  }
  0xb7   :  { %365 = dma.done.wait [#allocation4], 128  }
  0xb8   :  { %366 = vsyncadd [#allocation4], 4294967168 }
  0xb9   :  { %367 = dma.done.wait [#allocation12], 128  }
  0xba   :  { %368 = vsyncadd [#allocation12], 4294967168 }
  0xbb   :  { %200 = vsyncpa [#allocation3], 1 }
  0xbc   :  { %201 = vsyncpa [#allocation6], 1 }
  0xbd   :  { %202 = vsyncpa [#allocation9], 1 }
  0xbe   :  { %203 = vsyncpa [#allocation4], 1 }
  0xbf   :  { %204 = vsyncpa [#allocation12], 1 }

</bundles_post_ra>
